<compile_context>
chip_gen: v7x
topology: tpu7x:2x2x1
jax: 0.10.0
libtpu: 0.0.40
codegen_flags: <defaults>
</compile_context>

<pallas_src>
import functools

import jax
import jax.numpy as jnp
from jax.experimental import pallas as pl
from jax.experimental.pallas import tpu as pltpu

N_ACTIONS = 100
cell = 10
regionnum = cell * cell
N_STATES = 3 * regionnum + 1   # 301
HIDDEN = 256

K_PAD = 384      # next multiple of 128 >= 301 (contraction dim)
OUT_PAD = 128    # next multiple of 128 >= 100 (output lane dim)
MAX_TB = 512     # max batch-tile rows per grid step (keeps VMEM tiny everywhere)


def _round_up(n, m):
    return ((n + m - 1) // m) * m


def net_kernel(x_ref, w1_ref, b1_ref, w2_ref, b2_ref, o_ref):
    # fc1: bf16 operands on the MXU, f32 accumulation
    h = jnp.dot(x_ref[...], w1_ref[...], preferred_element_type=jnp.float32)
    # bias + ReLU epilogue in f32
    h = jnp.maximum(h + b1_ref[...], 0.0)
    # out layer: cast activations back to bf16 for the second MXU pass
    y = jnp.dot(h.astype(jnp.bfloat16), w2_ref[...],
                preferred_element_type=jnp.float32)
    o_ref[...] = y + b2_ref[...]


def prepare_params(w1, b1, w2, b2):
    """One-time: pad weights to lane-aligned shapes and cast matmul operands to bf16.

    Padded rows/cols are zero, so results are unchanged.
    """
    w1p = jnp.zeros((K_PAD, HIDDEN), jnp.bfloat16)
    w1p = w1p.at[:N_STATES, :].set(w1.astype(jnp.bfloat16))
    w2p = jnp.zeros((HIDDEN, OUT_PAD), jnp.bfloat16)
    w2p = w2p.at[:, :N_ACTIONS].set(w2.astype(jnp.bfloat16))
    b1p = b1.astype(jnp.float32).reshape(1, HIDDEN)
    b2p = jnp.zeros((1, OUT_PAD), jnp.float32)
    b2p = b2p.at[:, :N_ACTIONS].set(b2.astype(jnp.float32).reshape(1, N_ACTIONS))
    return w1p, b1p, w2p, b2p


@jax.jit
def net_forward(x, w1p, b1p, w2p, b2p):
    B = x.shape[0]
    # Batch tile: at least 8 (sublane), at most MAX_TB; pad batch to a multiple.
    tb = min(MAX_TB, _round_up(max(B, 8), 8))
    b_pad = _round_up(B, tb)

    # Zero-pad batch rows and the feature (lane) axis, cast activations to bf16.
    xp = jnp.zeros((b_pad, K_PAD), jnp.bfloat16)
    xp = xp.at[:B, :N_STATES].set(x.astype(jnp.bfloat16))

    out = pl.pallas_call(
        net_kernel,
        out_shape=jax.ShapeDtypeStruct((b_pad, OUT_PAD), jnp.float32),
        grid_spec=pltpu.PrefetchScalarGridSpec(
            num_scalar_prefetch=0,
            grid=(b_pad // tb,),
            in_specs=[
                pl.BlockSpec((tb, K_PAD), lambda i: (i, 0)),        # x tile (pipelined)
                pl.BlockSpec((K_PAD, HIDDEN), lambda i: (0, 0)),    # W1 (resident)
                pl.BlockSpec((1, HIDDEN), lambda i: (0, 0)),        # b1 (resident)
                pl.BlockSpec((HIDDEN, OUT_PAD), lambda i: (0, 0)),  # W2 (resident)
                pl.BlockSpec((1, OUT_PAD), lambda i: (0, 0)),       # b2 (resident)
            ],
            out_specs=pl.BlockSpec((tb, OUT_PAD), lambda i: (i, 0)),
        ),
        compiler_params=pltpu.CompilerParams(
            dimension_semantics=("parallel",),   # megacore sharding on v7x
        ),
    )(xp, w1p, b1p, w2p, b2p)

    # Strip batch padding and the lane padding of the output (128 -> 100).
    return out[:B, :N_ACTIONS]


def init_params(key):
    k1, k2, k3, k4 = jax.random.split(key, 4)
    # PyTorch: weight ~ Normal(0, 0.1); bias keeps default U(-1/sqrt(fan_in), 1/sqrt(fan_in)).
    # Stored transposed relative to nn.Linear ([out,in] -> [in,out]).
    w1 = jax.random.normal(k1, (N_STATES, HIDDEN), jnp.float32) * 0.1
    b1 = jax.random.uniform(k2, (1, HIDDEN), jnp.float32,
                            minval=-1.0 / jnp.sqrt(N_STATES),
                            maxval=1.0 / jnp.sqrt(N_STATES))
    w2 = jax.random.normal(k3, (HIDDEN, N_ACTIONS), jnp.float32) * 0.1
    b2 = jax.random.uniform(k4, (1, N_ACTIONS), jnp.float32,
                            minval=-1.0 / jnp.sqrt(HIDDEN),
                            maxval=1.0 / jnp.sqrt(HIDDEN))
    return w1, b1, w2, b2


if __name__ == "__main__":
    key = jax.random.PRNGKey(0)
    kx, kp = jax.random.split(key)
    B = 4
    x = jax.random.normal(kx, (B, N_STATES), jnp.float32)
    w1, b1, w2, b2 = init_params(kp)
    w1p, b1p, w2p, b2p = prepare_params(w1, b1, w2, b2)

    out = net_forward(x, w1p, b1p, w2p, b2p)
    out = jax.block_until_ready(out)

    # Reference in plain JAX with the same bf16 operand quantization / f32 accumulation.
    xb = x.astype(jnp.bfloat16).astype(jnp.float32)
    w1b = w1.astype(jnp.bfloat16).astype(jnp.float32)
    w2b = w2.astype(jnp.bfloat16).astype(jnp.float32)
    h_ref = jnp.maximum(
        jnp.dot(xb, w1b, preferred_element_type=jnp.float32) + b1, 0.0)
    ref = jnp.dot(h_ref.astype(jnp.bfloat16).astype(jnp.float32), w2b,
                  preferred_element_type=jnp.float32) + b2

    assert out.shape == (B, N_ACTIONS)
    assert jnp.allclose(out, ref, atol=1e-2, rtol=1e-2), \
        float(jnp.max(jnp.abs(out - ref)))

    print("KERNEL_OK")
</pallas_src>

<mosaic_0001>
module attributes {stable_mosaic.version = 11 : i64} {
  func.func @net_kernel(%arg0: i32, %arg1: memref<8x384xbf16, #tpu.memory_space<vmem>>, %arg2: memref<384x256xbf16, #tpu.memory_space<vmem>>, %arg3: memref<1x256xf32, #tpu.memory_space<vmem>>, %arg4: memref<256x128xbf16, #tpu.memory_space<vmem>>, %arg5: memref<1x128xf32, #tpu.memory_space<vmem>>, %arg6: memref<8x128xf32, #tpu.memory_space<vmem>>) attributes {dimension_semantics = [#tpu.dimension_semantics<parallel>], iteration_bounds = array<i64: 1>, scalar_prefetch = 0 : i64, scratch_operands = 0 : i64, tpu.core_type = #tpu.core_type<tc>, window_params = [{transform_indices = @transform_0, window_bounds = array<i64: 8, 384>}, {pipeline_mode = #tpu.pipeline_mode<synchronous>, transform_indices = @transform_1, window_bounds = array<i64: 384, 256>}, {pipeline_mode = #tpu.pipeline_mode<synchronous>, transform_indices = @transform_2, window_bounds = array<i64: 1, 256>}, {pipeline_mode = #tpu.pipeline_mode<synchronous>, transform_indices = @transform_3, window_bounds = array<i64: 256, 128>}, {pipeline_mode = #tpu.pipeline_mode<synchronous>, transform_indices = @transform_4, window_bounds = array<i64: 1, 128>}, {transform_indices = @transform_5, window_bounds = array<i64: 8, 128>}]} {
    %c0 = arith.constant 0 : index
    %c0_0 = arith.constant 0 : index
    %0 = vector.load %arg1[%c0, %c0_0] : memref<8x384xbf16, #tpu.memory_space<vmem>>, vector<8x384xbf16>
    %c0_1 = arith.constant 0 : index
    %c0_2 = arith.constant 0 : index
    %1 = vector.load %arg2[%c0_1, %c0_2] : memref<384x256xbf16, #tpu.memory_space<vmem>>, vector<384x256xbf16>
    %cst = arith.constant dense<0.000000e+00> : vector<8x256xf32>
    %2 = tpu.matmul %0, %1, %cst {dimension_numbers = #tpu.dot_dimension_numbers<[1], [0], [0], [1], [0, 0, 1, 1], [], []>} : vector<8x384xbf16>, vector<384x256xbf16>, vector<8x256xf32> -> vector<8x256xf32>
    %c0_3 = arith.constant 0 : index
    %c0_4 = arith.constant 0 : index
    %3 = vector.load %arg3[%c0_3, %c0_4] : memref<1x256xf32, #tpu.memory_space<vmem>>, vector<1x256xf32>
    %4 = vector.broadcast %3 : vector<1x256xf32> to vector<8x256xf32>
    %5 = arith.addf %2, %4 : vector<8x256xf32>
    %cst_5 = arith.constant 0.000000e+00 : f32
    %6 = vector.broadcast %cst_5 : f32 to vector<8x256xf32>
    %7 = arith.maximumf %5, %6 : vector<8x256xf32>
    %8 = arith.truncf %7 : vector<8x256xf32> to vector<8x256xbf16>
    %c0_6 = arith.constant 0 : index
    %c0_7 = arith.constant 0 : index
    %9 = vector.load %arg4[%c0_6, %c0_7] : memref<256x128xbf16, #tpu.memory_space<vmem>>, vector<256x128xbf16>
    %cst_8 = arith.constant dense<0.000000e+00> : vector<8x128xf32>
    %10 = tpu.matmul %8, %9, %cst_8 {dimension_numbers = #tpu.dot_dimension_numbers<[1], [0], [0], [1], [0, 0, 1, 1], [], []>} : vector<8x256xbf16>, vector<256x128xbf16>, vector<8x128xf32> -> vector<8x128xf32>
    %c0_9 = arith.constant 0 : index
    %c0_10 = arith.constant 0 : index
    %11 = vector.load %arg5[%c0_9, %c0_10] : memref<1x128xf32, #tpu.memory_space<vmem>>, vector<1x128xf32>
    %12 = vector.broadcast %11 : vector<1x128xf32> to vector<8x128xf32>
    %13 = arith.addf %10, %12 : vector<8x128xf32>
    %c0_11 = arith.constant 0 : index
    %c0_12 = arith.constant 0 : index
    %14 = vector.load %arg6[%c0_11, %c0_12] : memref<8x128xf32, #tpu.memory_space<vmem>>, vector<8x128xf32>
    tpu.vector_store %arg6[%c0_11, %c0_12], %13 {strides = array<i32>} : memref<8x128xf32, #tpu.memory_space<vmem>>, vector<8x128xf32>,
    return
  }
  func.func @transform_0(%arg0: i32) -> (i32, i32) {
    %c0_i32 = arith.constant 0 : i32
    %c0_i32_0 = arith.constant 0 : i32
    return %arg0, %c0_i32 : i32, i32
  }
  func.func @transform_1(%arg0: i32) -> (i32, i32) {
    %c0_i32 = arith.constant 0 : i32
    %c0_i32_0 = arith.constant 0 : i32
    %c0_i32_1 = arith.constant 0 : i32
    return %c0_i32, %c0_i32_0 : i32, i32
  }
  func.func @transform_2(%arg0: i32) -> (i32, i32) {
    %c0_i32 = arith.constant 0 : i32
    %c0_i32_0 = arith.constant 0 : i32
    %c0_i32_1 = arith.constant 0 : i32
    return %c0_i32, %c0_i32_0 : i32, i32
  }
  func.func @transform_3(%arg0: i32) -> (i32, i32) {
    %c0_i32 = arith.constant 0 : i32
    %c0_i32_0 = arith.constant 0 : i32
    %c0_i32_1 = arith.constant 0 : i32
    return %c0_i32, %c0_i32_0 : i32, i32
  }
  func.func @transform_4(%arg0: i32) -> (i32, i32) {
    %c0_i32 = arith.constant 0 : i32
    %c0_i32_0 = arith.constant 0 : i32
    %c0_i32_1 = arith.constant 0 : i32
    return %c0_i32, %c0_i32_0 : i32, i32
  }
  func.func @transform_5(%arg0: i32) -> (i32, i32) {
    %c0_i32 = arith.constant 0 : i32
    %c0_i32_0 = arith.constant 0 : i32
    return %arg0, %c0_i32 : i32, i32
  }
}

</mosaic_0001>

<bundles_post_ra>
// kernel: net_forward.1
= control target key start
LH: loop header
LB: loop body
LE: loop exit
PB: predicated region body
PF: predicated region fallthrough
CT: control target
= control target key end

     0   :  { %10 = vsyncpa [#allocation3], 0  ;;  %s946_s0 = inlined_call_operand.vmem [shape: bf16[8,384], index: 0, kind: input, shape index: {}]   ;;  %s947_s1 = inlined_call_operand.hbm [shape: bf16[384,256], index: 1, kind: input, shape index: {}]   ;;  %s948_s2 = inlined_call_operand.vmem [shape: f32[1,256], index: 2, kind: input, shape index: {}]   ;;  %s949_s3 = inlined_call_operand.hbm [shape: bf16[256,128], index: 3, kind: input, shape index: {}]   ;;  %s950_s4 = inlined_call_operand.vmem [shape: f32[1,128], index: 4, kind: input, shape index: {}]   ;;  %s951_s5 = inlined_call_operand.vmem [shape: f32[8,128], index: 5, kind: output, shape index: {}]  }
   0x1   :  { %11 = vsyncpa [#allocation5], 0  ;;  %s870_s18 = smov [#allocation2]   ;;  %s822_s22 = scalar_lea.hbm %s947_s1, 6144 }
   0x2   :  { %s19_s19 = sshll.u32 %s870_s18, 4  ;;  %p823_p0 = scmp.ne.s32.totalorder %s947_s1, %s822_s22  ;;  %s20_s19 = int_to_ptr.vmem [resolvable:$true] %s19_s19 }
   0x3   :  { %p826_p1 = scmp.lt.u32.totalorder %s822_s22, %s947_s1 }
   0x5   :  { %p828_p2 = pnand %p826_p1, %p823_p0 }
   0x7   :  { %831 = shalt.err (!%p828_p2)
}
   0x8   :  { %s832_s27 = scalar_lea.vmem %s20_s19, 6144  ;;  %p837_p4 = scmp.lt.s32.totalorder %s20_s19, %s20_s19 }
   0x9   :  { %p833_p3 = scmp.ne.s32.totalorder %s20_s19, %s832_s27  ;;  %p838_p5 = scmp.lt.s32.totalorder %s832_s27, %s832_s27 }
   0xb   :  { %p839_p6 = por %p838_p5, %p837_p4 }
   0xd   :  { %p840_p7 = pnand %p839_p6, %p833_p3 }
   0xf   :  { %843 = shalt.err (!%p840_p7)
}
  0x10   :  { %s871_s28 = smov 128   ;;  %s872_s29 = smov 8  }
  0x11   :  { %25 = dma.hbm_to_vmem [thread:$0]  %s947_s1, 6144, %s20_s19, [#allocation3], %s871_s28, %s871_s28, %s872_s29  }
  0x12   :  { %s873_s7 = smov [#allocation4]   ;;  %s844_s11 = scalar_lea.hbm %s949_s3, 2048 }
  0x13   :  { %s33_s8 = sshll.u32 %s873_s7, 4  ;;  %p845_p8 = scmp.ne.s32.totalorder %s949_s3, %s844_s11  ;;  %s34_s8 = int_to_ptr.vmem [resolvable:$true] %s33_s8 }
  0x14   :  { %p848_p9 = scmp.lt.u32.totalorder %s844_s11, %s949_s3 }
  0x16   :  { %p850_p10 = pnand %p848_p9, %p845_p8 }
  0x18   :  { %853 = shalt.err (!%p850_p10)
}
  0x19   :  { %s854_s16 = scalar_lea.vmem %s34_s8, 2048  ;;  %p859_p12 = scmp.lt.s32.totalorder %s34_s8, %s34_s8 }
  0x1a   :  { %p855_p11 = scmp.ne.s32.totalorder %s34_s8, %s854_s16  ;;  %p860_p13 = scmp.lt.s32.totalorder %s854_s16, %s854_s16 }
  0x1c   :  { %p861_p0 = por %p860_p13, %p859_p12 }
  0x1e   :  { %p862_p1 = pnand %p861_p0, %p855_p11 }
  0x20   :  { %865 = shalt.err (!%p862_p1)
}
  0x21   :  { %s874_s1 = smov 64   ;;  %s875_s17 = smov 4  }
  0x22   :  { %39 = dma.hbm_to_vmem [thread:$0]  %s949_s3, 2048, %s34_s8, [#allocation5], %s874_s1, %s874_s1, %s875_s17  }
  0x23   :  { %866 = dma.done.wait [#allocation3], 6144  }
  0x24   :  { %867 = vsyncadd [#allocation3], 4294961152 }
  0x25   :  { %868 = dma.done.wait [#allocation5], 2048  }
  0x26   :  { %869 = vsyncadd [#allocation5], 4294965248  ;;  %v876_v0 = vmov 0   ;;  %v731_v1 = vld [vmem:[#allocation2 + $0x4] ss:$8 sps:$4 sm:$0xff]   ;;  %v810_v50 = vld [vmem:[#allocation4 + $0x50] sm:$0xff]  }
  0x27   :  { %435 = vmatprep.mubr.bf16.mxu1 %v876_v0  ;;  %v733_v2 = vld [vmem:[#allocation2] ss:$8 sps:$4 sm:$0xff]   ;;  %362 = vmatprep.subr.bf16.mxu0 %v731_v1  ;;  %v734_v3 = vld [vmem:[#allocation2 + $0x14] ss:$8 sps:$4 sm:$0xff]   ;;  %v736_v4 = vld [vmem:[#allocation2 + $0x10] ss:$8 sps:$4 sm:$0xff]  }
  0x28   :  { %363 = vmatpush1.bf16.msra.mxu0 %v733_v2  ;;  %v737_v5 = vld [vmem:[#allocation2 + $0x24] ss:$8 sps:$4 sm:$0xff]   ;;  %v739_v6 = vld [vmem:[#allocation2 + $0x20] ss:$8 sps:$4 sm:$0xff]   ;;  %v740_v7 = vld [vmem:[#allocation2 + $0x34] ss:$8 sps:$4 sm:$0xff]  }
  0x29   :  { %364 = vmatprep.subr.bf16.mxu0 %v734_v3  ;;  %v742_v8 = vld [vmem:[#allocation2 + $0x30] ss:$8 sps:$4 sm:$0xff]   ;;  %v755_v9 = vld [vmem:[#allocation2 + $0x104] ss:$8 sps:$4 sm:$0xff]   ;;  %v759_v11 = vld [vmem:[#allocation2 + $0x100] ss:$8 sps:$4 sm:$0xff]  }
  0x2a   :  { %v743_v10 = vld [vmem:[#allocation2 + $0x44] ss:$8 sps:$4 sm:$0xff]   ;;  %403 = vmatprep.subr.bf16.mxu1 %v755_v9  ;;  %v761_v12 = vld [vmem:[#allocation2 + $0x114] ss:$8 sps:$4 sm:$0xff]   ;;  %v745_v13 = vld [vmem:[#allocation2 + $0x40] ss:$8 sps:$4 sm:$0xff]   ;;  %v101_v9 = vlaneseq }
  0x2b   :  { %404 = vmatpush1.bf16.msra.mxu1 %v759_v11  ;;  %v746_v14 = vld [vmem:[#allocation2 + $0x54] ss:$8 sps:$4 sm:$0xff]   ;;  %v765_v15 = vld [vmem:[#allocation2 + $0x110] ss:$8 sps:$4 sm:$0xff]   ;;  %v767_v16 = vld [vmem:[#allocation2 + $0x124] ss:$8 sps:$4 sm:$0xff]  }
  0x2c   :  { %365 = vmatpush1.bf16.msra.mxu0 %v736_v4  ;;  %405 = vmatprep.subr.bf16.mxu1 %v761_v12  ;;  %v748_v17 = vld [vmem:[#allocation2 + $0x50] ss:$8 sps:$4 sm:$0xff]   ;;  %v771_v18 = vld [vmem:[#allocation2 + $0x120] ss:$8 sps:$4 sm:$0xff]   ;;  %v773_v19 = vld [vmem:[#allocation2 + $0x134] ss:$8 sps:$4 sm:$0xff]  }
  0x2d   :  { %366 = vmatprep.subr.bf16.mxu0 %v737_v5  ;;  %v749_v20 = vld [vmem:[#allocation2 + $0x64] ss:$8 sps:$4 sm:$0xff]   ;;  %v777_v21 = vld [vmem:[#allocation2 + $0x130] ss:$8 sps:$4 sm:$0xff]   ;;  %v751_v22 = vld [vmem:[#allocation2 + $0x60] ss:$8 sps:$4 sm:$0xff]  }
  0x2e   :  { %v779_v23 = vld [vmem:[#allocation2 + $0x144] ss:$8 sps:$4 sm:$0xff]   ;;  %v752_v24 = vld [vmem:[#allocation2 + $0x74] ss:$8 sps:$4 sm:$0xff]   ;;  %v754_v25 = vld [vmem:[#allocation2 + $0x70] ss:$8 sps:$4 sm:$0xff]  }
  0x2f   :  { %406 = vmatpush1.bf16.msra.mxu1 %v765_v15  ;;  %v783_v26 = vld [vmem:[#allocation2 + $0x140] ss:$8 sps:$4 sm:$0xff]   ;;  %v785_v27 = vld [vmem:[#allocation2 + $0x154] ss:$8 sps:$4 sm:$0xff]   ;;  %v757_v28 = vld [vmem:[#allocation2 + $0x84] ss:$8 sps:$4 sm:$0xff]  }
  0x30   :  { %367 = vmatpush1.bf16.msra.mxu0 %v739_v6  ;;  %407 = vmatprep.subr.bf16.mxu1 %v767_v16  ;;  %v789_v29 = vld [vmem:[#allocation2 + $0x150] ss:$8 sps:$4 sm:$0xff]   ;;  %v760_v30 = vld [vmem:[#allocation2 + $0x80] ss:$8 sps:$4 sm:$0xff]   ;;  %v791_v31 = vld [vmem:[#allocation2 + $0x164] ss:$8 sps:$4 sm:$0xff]  }
  0x31   :  { %368 = vmatprep.subr.bf16.mxu0 %v740_v7  ;;  %v763_v32 = vld [vmem:[#allocation2 + $0x94] ss:$8 sps:$4 sm:$0xff]   ;;  %v49_v33 = vld [vmem:[%s946_s0] sm:$0xff]  ;;  %v766_v34 = vld [vmem:[#allocation2 + $0x90] ss:$8 sps:$4 sm:$0xff]  }
  0x32   :  { %v631_v35 = vcombine.high %v49_v33, %v49_v33  ;;  %v795_v36 = vld [vmem:[#allocation2 + $0x160] ss:$8 sps:$4 sm:$0xff]   ;;  %v797_v37 = vld [vmem:[#allocation2 + $0x174] ss:$8 sps:$4 sm:$0xff]   ;;  %v769_v38 = vld [vmem:[#allocation2 + $0xa4] ss:$8 sps:$4 sm:$0xff]   ;;  %v630_v62 = vcombine.low %v49_v33, %v49_v33 }
  0x33   :  { %408 = vmatpush1.bf16.msra.mxu1 %v771_v18  ;;  %v772_v39 = vld [vmem:[#allocation2 + $0xa0] ss:$8 sps:$4 sm:$0xff]   ;;  %v775_v40 = vld [vmem:[#allocation2 + $0xb4] ss:$8 sps:$4 sm:$0xff]   ;;  %v801_v41 = vld [vmem:[#allocation2 + $0x170] ss:$8 sps:$4 sm:$0xff]  }
  0x34   :  { %369 = vmatpush1.bf16.msra.mxu0 %v742_v8  ;;  %409 = vmatprep.subr.bf16.mxu1 %v773_v19  ;;  %v806_v42 = vld [vmem:[#allocation4 + $0x40] sm:$0xff]   ;;  %v805_v43 = vld [vmem:[%s946_s0 + $0x8] ss:$0 sps:$4 sm:$0xff]   ;;  %v778_v44 = vld [vmem:[#allocation2 + $0xb0] ss:$8 sps:$4 sm:$0xff]  }
  0x35   :  { %370 = vmatprep.subr.bf16.mxu0 %v743_v10  ;;  %394 = vmatprep.mubr.bf16.mxu0 %v631_v35  ;;  %v807_v45 = vld [vmem:[#allocation4] sm:$0xff]   ;;  %v808_v47 = vld [vmem:[#allocation4 + $0x48] sm:$0xff]   ;;  %v787_v51 = vld [vmem:[#allocation2 + $0xd4] ss:$8 sps:$4 sm:$0xff]   ;;  %v102_v10 = vshrl.u32 %v101_v9, 7 }
  0x36   :  { %v781_v46 = vld [vmem:[#allocation2 + $0xc4] ss:$8 sps:$4 sm:$0xff]   ;;  %v784_v49 = vld [vmem:[#allocation2 + $0xc0] ss:$8 sps:$4 sm:$0xff]   ;;  %v811_v52 = vld [vmem:[#allocation4 + $0x10] sm:$0xff]  }
  0x37   :  { %410 = vmatpush1.bf16.msra.mxu1 %v777_v21  ;;  %v809_v48 = vld [vmem:[#allocation4 + $0x8] sm:$0xff]   ;;  %v790_v53 = vld [vmem:[#allocation2 + $0xd0] ss:$8 sps:$4 sm:$0xff]   ;;  %v814_v58 = vld [vmem:[#allocation4 + $0x60] sm:$0xff]   ;;  %v103_v11 = vsub.s32 0, %v102_v10 }
  0x38   :  { %371 = vmatpush1.bf16.msra.mxu0 %v745_v13  ;;  %411 = vmatprep.subr.bf16.mxu1 %v779_v23  ;;  %v812_v54 = vld [vmem:[#allocation4 + $0x58] sm:$0xff]   ;;  %v793_v55 = vld [vmem:[#allocation2 + $0xe4] ss:$8 sps:$4 sm:$0xff]   ;;  %v796_v57 = vld [vmem:[#allocation2 + $0xe0] ss:$8 sps:$4 sm:$0xff]   ;;  %v107_v13 = vsub.s32 1, %v102_v10 }
  0x39   :  { %372 = vmatprep.subr.bf16.mxu0 %v746_v14  ;;  %v813_v56 = vld [vmem:[#allocation4 + $0x18] sm:$0xff]   ;;  %v815_v60 = vld [vmem:[#allocation4 + $0x20] sm:$0xff]   ;;  %v816_v63 = vld [vmem:[#allocation4 + $0x68] sm:$0xff]  }
  0x3a   :  { %v799_v59 = vld [vmem:[#allocation2 + $0xf4] ss:$8 sps:$4 sm:$0xff]   ;;  %v802_v61 = vld [vmem:[#allocation2 + $0xf0] ss:$8 sps:$4 sm:$0xff]   ;;  %v817_v0 = vld [vmem:[#allocation4 + $0x28] sm:$0xff]  }
  0x3b   :  { %412 = vmatpush1.bf16.msra.mxu1 %v783_v26  ;;  %v818_v1 = vld [vmem:[#allocation4 + $0x70] sm:$0xff]   ;;  %v820_v3 = vld [vmem:[#allocation4 + $0x78] sm:$0xff]   ;;  %v99_v12 = vld [vmem:[%s948_s2] sm:$0x3] }
  0x3c   :  { %373 = vmatpush1.bf16.msra.mxu0 %v748_v17  ;;  %413 = vmatprep.subr.bf16.mxu1 %v785_v27  ;;  %v819_v2 = vld [vmem:[#allocation4 + $0x30] sm:$0xff]   ;;  %v821_v4 = vld [vmem:[#allocation4 + $0x38] sm:$0xff]   ;;  %v104_v14 = vrot.slane %v99_v12, %v103_v11  ;;  %v108_v15 = vrot.slane %v99_v12, %v107_v13 }
  0x3d   :  { %374 = vmatprep.subr.bf16.mxu0 %v749_v20 }
  0x3f   :  { %414 = vmatpush1.bf16.msra.mxu1 %v789_v29  ;;  %v681_v29 = vld [vmem:[%s950_s4] ss:$0 sm:$0xff] }
  0x40   :  { %375 = vmatpush1.bf16.msra.mxu0 %v751_v22  ;;  %415 = vmatprep.subr.bf16.mxu1 %v791_v31 }
  0x41   :  { %376 = vmatprep.subr.bf16.mxu0 %v752_v24 }
  0x43   :  { %416 = vmatpush1.bf16.msra.mxu1 %v795_v36 }
  0x44   :  { %377 = vmatpush1.bf16.msra.mxu0 %v754_v25  ;;  %417 = vmatprep.subr.bf16.mxu1 %v797_v37 }
  0x45   :  { %378 = vmatprep.subr.bf16.mxu0 %v757_v28 }
  0x47   :  { %418 = vmatpush1.bf16.msra.mxu1 %v801_v41 }
  0x48   :  { %379 = vmatpush1.bf16.msra.mxu0 %v760_v30  ;;  %698 = vmatprep.subr.bf16.mxu1 %v806_v42 }
  0x49   :  { %380 = vmatprep.subr.bf16.mxu0 %v763_v32 }
  0x4a   :  { %436 = vmatmul.mubr.bf16.vlgmr.msra.gmra.mrb[0].mxu1 %v805_v43 }
  0x4b   :  { %699 = vmatpush3.bf16.msra.mxu1 %v807_v45 }
  0x4c   :  { %381 = vmatpush1.bf16.msra.mxu0 %v766_v34  ;;  %700 = vmatprep.subr.bf16.mxu1 %v808_v47 }
  0x4d   :  { %382 = vmatprep.subr.bf16.mxu0 %v769_v38 }
  0x4f   :  { %701 = vmatpush3.bf16.msra.mxu1 %v809_v48 }
  0x50   :  { %383 = vmatpush1.bf16.msra.mxu0 %v772_v39  ;;  %702 = vmatprep.subr.bf16.mxu1 %v810_v50 }
  0x51   :  { %384 = vmatprep.subr.bf16.mxu0 %v775_v40 }
  0x53   :  { %703 = vmatpush3.bf16.msra.mxu1 %v811_v52 }
  0x54   :  { %385 = vmatpush1.bf16.msra.mxu0 %v778_v44  ;;  %704 = vmatprep.subr.bf16.mxu1 %v812_v54 }
  0x55   :  { %386 = vmatprep.subr.bf16.mxu0 %v781_v46 }
  0x57   :  { %705 = vmatpush3.bf16.msra.mxu1 %v813_v56 }
  0x58   :  { %387 = vmatpush1.bf16.msra.mxu0 %v784_v49  ;;  %706 = vmatprep.subr.bf16.mxu1 %v814_v58 }
  0x59   :  { %388 = vmatprep.subr.bf16.mxu0 %v787_v51 }
  0x5b   :  { %707 = vmatpush3.bf16.msra.mxu1 %v815_v60 }
  0x5c   :  { %389 = vmatpush1.bf16.msra.mxu0 %v790_v53  ;;  %708 = vmatprep.subr.bf16.mxu1 %v816_v63 }
  0x5d   :  { %390 = vmatprep.subr.bf16.mxu0 %v793_v55 }
  0x5f   :  { %709 = vmatpush3.bf16.msra.mxu1 %v817_v0 }
  0x60   :  { %391 = vmatpush1.bf16.msra.mxu0 %v796_v57  ;;  %710 = vmatprep.subr.bf16.mxu1 %v818_v1 }
  0x61   :  { %392 = vmatprep.subr.bf16.mxu0 %v799_v59 }
  0x63   :  { %711 = vmatpush3.bf16.msra.mxu1 %v819_v2 }
  0x64   :  { %393 = vmatpush1.bf16.msra.mxu0 %v802_v61  ;;  %712 = vmatprep.subr.bf16.mxu1 %v820_v3 }
  0x67   :  { %395 = vmatmul.mubr.bf16.vlgmr.msra.gmra.mrb[0].mxu0 %v630_v62  ;;  %713 = vmatpush3.bf16.msra.mxu1 %v821_v4 }
 0x11d   :  { %v437_v5 = vpop.f32.mrb[0].mxu1 }
 0x11e   :  { %v439_v6 = vpop.f32.mrb[1].mxu1 }
 0x11f   :  { %v441_v7 = vpop.f32.mrb[2].mxu1 }
 0x120   :  { %v442_v8 = vpop.f32.mrb[3].mxu1 }
 0x13a   :  { %v396_v16 = vpop.f32.mrb[0].mxu0 }
 0x13b   :  { %v397_v17 = vadd.f32 %v396_v16, %v104_v14  ;;  %v398_v18 = vpop.f32.mrb[1].mxu0 }
 0x13c   :  { %v399_v19 = vadd.f32 %v398_v18, %v108_v15  ;;  %v400_v20 = vpop.f32.mrb[2].mxu0 }
 0x13d   :  { %v438_v21 = vadd.f32 %v437_v5, %v397_v17  ;;  %v401_v22 = vpop.f32.mrb[3].mxu0 }
 0x13e   :  { %v440_v23 = vadd.f32 %v439_v6, %v399_v19 }
 0x13f   :  { %v444_v24 = vmax.f32 %v438_v21, 0.0 }
 0x140   :  { %v445_v25 = vmax.f32 %v440_v23, 0.0 }
 0x141   :  { %v446_v27 = vpack.c.bf16 %v444_v24, %v444_v24 }
 0x142   :  { %v447_v26 = vpack.c.bf16 %v445_v25, %v445_v25 }
 0x144   :  { %615 = vmatprep.mubr.bf16.mxu1 %v447_v26 }
 0x145   :  { %616 = vmatmul.mubr.bf16.vlgmr.msra.gmra.mrb[4].mxu1 %v446_v27 }
 0x218   :  { %v714_v28 = vpop.f32.mrb[4].mxu1 }
 0x219   :  { %v715_v30 = vpop.f32.mrb[5].mxu1 }
 0x21a   :  { %v716_v31 = vadd.f32 %v715_v30, %v714_v28  ;;  %v717_v32 = vpop.f32.mrb[6].mxu1 }
 0x21b   :  { %v718_v33 = vpop.f32.mrb[7].mxu1 }
 0x21c   :  { %v618_v34 = vadd.f32 %v716_v31, %v681_v29 }
 0x21e   :  { %623 = vst [vmem:[%s951_s5] sm:$0xff] %v618_v34 }
 0x21f   :  { %628 = vsyncpa [#allocation3], 1 }
 0x220   :  { %629 = vsyncpa [#allocation5], 1 }

</bundles_post_ra>
